<compile_context>
chip_gen: v7x
topology: tpu7x:2x2x1
jax: 0.10.0
libtpu: 0.0.40
codegen_flags: <defaults>
</compile_context>

<pallas_src>
import functools

import jax
import jax.numpy as jnp
import numpy as np
from jax.experimental import pallas as pl
from jax.experimental.pallas import tpu as pltpu


def _round_up(x, m):
    return ((x + m - 1) // m) * m


def _hfl_kernel(d_ref, mr_ref, mi_ref, out_ref, *, alpha):
    """One batch of TB flattened patches: 2 MXU matmuls + lane-dense epilogue."""
    d = d_ref[...]                                               # (TB, HW) bf16
    # Re / (-Im) of the ortho-normalized 2-D DFT of each patch (f32 accumulation).
    re = jnp.dot(d, mr_ref[...], preferred_element_type=jnp.float32)
    im = jnp.dot(d, mi_ref[...], preferred_element_type=jnp.float32)
    fd = re * re + im * im                                       # |FFT(pred-target)|^2

    w = jnp.sqrt(fd)
    if alpha == 2.0:
        w = w * w
    elif alpha != 1.0:
        w = w ** alpha
    mx = jnp.max(w, axis=-1, keepdims=True)                      # per-patch max (lane reduce)
    w = w * pl.reciprocal(mx, approx=True)                       # EUP slot, not VALU divide
    w = jnp.where(jnp.isnan(w), 0.0, w)                          # all-zero patch -> 0
    w = jnp.clip(w, 0.0, 1.0)

    # Lane-dense partial sum for this block: (1, HW) row, summed in the wrapper.
    out_ref[...] = jnp.sum(w * fd, axis=0, keepdims=True)[None]


def _dft_kron(ph, pw):
    """Kronecker 2-D DFT matrices (real part, negated imag part), ortho-scaled, bf16."""
    kh = np.arange(ph)
    kw = np.arange(pw)
    ah = 2.0 * np.pi * np.outer(kh, kh) / ph
    aw = 2.0 * np.pi * np.outer(kw, kw) / pw
    ch, sh = np.cos(ah), np.sin(ah)
    cw, sw = np.cos(aw), np.sin(aw)
    scale = 1.0 / np.sqrt(ph * pw)                               # 'ortho' normalization
    # row index = h*pw + w (input), col index = u*pw + v (output frequency)
    mr = (ch[:, None, :, None] * cw[None, :, None, :]
          - sh[:, None, :, None] * sw[None, :, None, :]).reshape(ph * pw, ph * pw) * scale
    mi = (ch[:, None, :, None] * sw[None, :, None, :]
          + sh[:, None, :, None] * cw[None, :, None, :]).reshape(ph * pw, ph * pw) * scale
    return jnp.asarray(mr, jnp.bfloat16), jnp.asarray(mi, jnp.bfloat16)


def hfl_loss(pred, target, *, loss_weight=1.0, alpha=1.0, patch_factor=1):
    """JAX/Pallas equivalent of HFL.forward(pred, target, matrix=None)."""
    # TODO(synk): the optional external `matrix` weight path and the
    # ave_spectrum / log_matrix / batch_matrix options are not translated;
    # only the module defaults (matrix=None) are implemented.
    N, C, H, W = pred.shape
    assert H % patch_factor == 0 and W % patch_factor == 0
    ph, pw = H // patch_factor, W // patch_factor
    HW = ph * pw
    # TODO(synk): the fused-Kronecker DFT keeps two (HW, HW) bf16 matrices resident
    # in VMEM; for large patches (HW > ~2048) a separable two-pass DFT is needed.

    def to_patches(x):
        # matches torch.stack of x[:, :, i*ph:(i+1)*ph, j*pw:(j+1)*pw] over (i, j) on dim 1
        x = x.reshape(N, C, patch_factor, ph, patch_factor, pw)
        x = jnp.transpose(x, (0, 2, 4, 1, 3, 5))                 # (N, pf, pf, C, ph, pw)
        return x.reshape(N * patch_factor * patch_factor * C, HW)

    # FFT(pred) - FFT(target) == FFT(pred - target): fuse the subtraction here and
    # ship a single bf16 slab to the kernel.
    d = to_patches(pred.astype(jnp.float32)) - to_patches(target.astype(jnp.float32))
    B = d.shape[0]                                               # N * patch_factor**2 * C
    d = d.astype(jnp.bfloat16)

    # Batch TB patches per grid step (sublane/M axis); lane axis is the full spectrum.
    TB = min(256, _round_up(B, 16))
    Bp = _round_up(B, TB)
    if Bp != B:
        d = jnp.pad(d, ((0, Bp - B), (0, 0)))                    # zero patches contribute 0
    num_blocks = Bp // TB

    mr, mi = _dft_kron(ph, pw)
    kernel = functools.partial(_hfl_kernel, alpha=float(alpha))

    partial_sums = pl.pallas_call(
        kernel,
        out_shape=jax.ShapeDtypeStruct((num_blocks, 1, HW), jnp.float32),
        grid=(num_blocks,),
        in_specs=[
            pl.BlockSpec((TB, HW), lambda i: (i, 0)),            # diff slab block
            pl.BlockSpec((HW, HW), lambda i: (0, 0)),            # DFT real-part matrix (resident)
            pl.BlockSpec((HW, HW), lambda i: (0, 0)),            # DFT imag-part matrix (resident)
        ],
        out_specs=pl.BlockSpec((1, 1, HW), lambda i: (i, 0, 0)), # lane-dense partial row per block
        compiler_params=pltpu.CompilerParams(
            dimension_semantics=("parallel",)),                  # shards across TCs on v7x
    )(d, mr, mi)

    count = B * HW                                               # elements averaged by torch.mean
    return (jnp.sum(partial_sums) / count) * loss_weight


def hfl_reference(pred, target, *, loss_weight=1.0, alpha=1.0, patch_factor=1):
    """Pure-JAX reference."""
    N, C, H, W = pred.shape
    ph, pw = H // patch_factor, W // patch_factor

    def to_patches(x):
        x = x.reshape(N, C, patch_factor, ph, patch_factor, pw)
        x = jnp.transpose(x, (0, 2, 4, 1, 3, 5))
        return x.reshape(N, patch_factor * patch_factor, C, ph, pw)

    fp = jnp.fft.fft2(to_patches(pred.astype(jnp.float32)), norm="ortho")
    ft = jnp.fft.fft2(to_patches(target.astype(jnp.float32)), norm="ortho")
    diff = fp - ft
    fd = diff.real ** 2 + diff.imag ** 2
    w = jnp.sqrt(fd) ** alpha
    w = w / jnp.max(w, axis=(-2, -1), keepdims=True)
    w = jnp.where(jnp.isnan(w), 0.0, w)
    w = jnp.clip(w, 0.0, 1.0)
    return jnp.mean(w * fd) * loss_weight


if __name__ == "__main__":
    key = jax.random.PRNGKey(0)
    k1, k2 = jax.random.split(key)
    pred = jax.random.normal(k1, (2, 4, 16, 16), dtype=jnp.float32)
    target = jax.random.normal(k2, (2, 4, 16, 16), dtype=jnp.float32)

    out = hfl_loss(pred, target, loss_weight=1.0, alpha=1.0, patch_factor=1)
    out = jax.block_until_ready(out)

    ref = jax.block_until_ready(hfl_reference(pred, target, loss_weight=1.0, alpha=1.0))
    assert np.isfinite(float(out)), out
    assert np.allclose(np.asarray(out), np.asarray(ref), rtol=5e-2, atol=1e-4), (out, ref)

    print("KERNEL_OK")
</pallas_src>

<mosaic_0001>
module attributes {stable_mosaic.version = 11 : i64} {
  func.func @_hfl_kernel(%arg0: i32, %arg1: memref<16x256xbf16, #tpu.memory_space<vmem>>, %arg2: memref<256x256xbf16, #tpu.memory_space<vmem>>, %arg3: memref<256x256xbf16, #tpu.memory_space<vmem>>, %arg4: memref<1x1x256xf32, #tpu.memory_space<vmem>>) attributes {dimension_semantics = [#tpu.dimension_semantics<parallel>], iteration_bounds = array<i64: 1>, scalar_prefetch = 0 : i64, scratch_operands = 0 : i64, tpu.core_type = #tpu.core_type<tc>, window_params = [{transform_indices = @transform_0, window_bounds = array<i64: 16, 256>}, {pipeline_mode = #tpu.pipeline_mode<synchronous>, transform_indices = @transform_1, window_bounds = array<i64: 256, 256>}, {pipeline_mode = #tpu.pipeline_mode<synchronous>, transform_indices = @transform_2, window_bounds = array<i64: 256, 256>}, {transform_indices = @transform_3, window_bounds = array<i64: 1, 1, 256>}]} {
    %c0 = arith.constant 0 : index
    %c0_0 = arith.constant 0 : index
    %0 = vector.load %arg1[%c0, %c0_0] : memref<16x256xbf16, #tpu.memory_space<vmem>>, vector<16x256xbf16>
    %c0_1 = arith.constant 0 : index
    %c0_2 = arith.constant 0 : index
    %1 = vector.load %arg2[%c0_1, %c0_2] : memref<256x256xbf16, #tpu.memory_space<vmem>>, vector<256x256xbf16>
    %cst = arith.constant dense<0.000000e+00> : vector<16x256xf32>
    %2 = tpu.matmul %0, %1, %cst {dimension_numbers = #tpu.dot_dimension_numbers<[1], [0], [0], [1], [0, 0, 1, 1], [], []>} : vector<16x256xbf16>, vector<256x256xbf16>, vector<16x256xf32> -> vector<16x256xf32>
    %c0_3 = arith.constant 0 : index
    %c0_4 = arith.constant 0 : index
    %3 = vector.load %arg3[%c0_3, %c0_4] : memref<256x256xbf16, #tpu.memory_space<vmem>>, vector<256x256xbf16>
    %cst_5 = arith.constant dense<0.000000e+00> : vector<16x256xf32>
    %4 = tpu.matmul %0, %3, %cst_5 {dimension_numbers = #tpu.dot_dimension_numbers<[1], [0], [0], [1], [0, 0, 1, 1], [], []>} : vector<16x256xbf16>, vector<256x256xbf16>, vector<16x256xf32> -> vector<16x256xf32>
    %5 = arith.mulf %2, %2 : vector<16x256xf32>
    %6 = arith.mulf %4, %4 : vector<16x256xf32>
    %7 = arith.addf %5, %6 : vector<16x256xf32>
    %8 = math.sqrt %7 : vector<16x256xf32>
    %cst_6 = arith.constant dense<0xFF800000> : vector<16xf32>
    %9 = vector.multi_reduction <maximumf>, %8, %cst_6 [1] : vector<16x256xf32> to vector<16xf32>
    %10 = vector.shape_cast %9 : vector<16xf32> to vector<16x1xf32>
    %11 = tpu.reciprocal %10 {approx = true} : vector<16x1xf32> -> vector<16x1xf32>
    %12 = vector.broadcast %11 : vector<16x1xf32> to vector<16x256xf32>
    %13 = arith.mulf %8, %12 : vector<16x256xf32>
    %14 = arith.cmpf one, %13, %13 : vector<16x256xf32>
    %cst_7 = arith.constant 0.000000e+00 : f32
    %15 = vector.broadcast %cst_7 : f32 to vector<16x256xf32>
    %16 = arith.select %14, %15, %13 : vector<16x256xi1>, vector<16x256xf32>
    %cst_8 = arith.constant 0.000000e+00 : f32
    %cst_9 = arith.constant 1.000000e+00 : f32
    %17 = vector.broadcast %cst_8 : f32 to vector<16x256xf32>
    %18 = arith.maximumf %17, %16 : vector<16x256xf32>
    %19 = vector.broadcast %cst_9 : f32 to vector<16x256xf32>
    %20 = arith.minimumf %19, %18 : vector<16x256xf32>
    %21 = arith.mulf %20, %7 : vector<16x256xf32>
    %cst_10 = arith.constant dense<0.000000e+00> : vector<256xf32>
    %22 = vector.multi_reduction <add>, %21, %cst_10 [0] : vector<16x256xf32> to vector<256xf32>
    %23 = vector.shape_cast %22 : vector<256xf32> to vector<1x256xf32>
    %24 = vector.shape_cast %23 : vector<1x256xf32> to vector<1x1x256xf32>
    %c0_11 = arith.constant 0 : index
    %c0_12 = arith.constant 0 : index
    %c0_13 = arith.constant 0 : index
    %25 = vector.load %arg4[%c0_11, %c0_12, %c0_13] : memref<1x1x256xf32, #tpu.memory_space<vmem>>, vector<1x1x256xf32>
    tpu.vector_store %arg4[%c0_11, %c0_12, %c0_13], %24 {strides = array<i32>} : memref<1x1x256xf32, #tpu.memory_space<vmem>>, vector<1x1x256xf32>,
    return
  }
  func.func @transform_0(%arg0: i32) -> (i32, i32) {
    %c0_i32 = arith.constant 0 : i32
    %c0_i32_0 = arith.constant 0 : i32
    return %arg0, %c0_i32 : i32, i32
  }
  func.func @transform_1(%arg0: i32) -> (i32, i32) {
    %c0_i32 = arith.constant 0 : i32
    %c0_i32_0 = arith.constant 0 : i32
    %c0_i32_1 = arith.constant 0 : i32
    return %c0_i32, %c0_i32_0 : i32, i32
  }
  func.func @transform_2(%arg0: i32) -> (i32, i32) {
    %c0_i32 = arith.constant 0 : i32
    %c0_i32_0 = arith.constant 0 : i32
    %c0_i32_1 = arith.constant 0 : i32
    return %c0_i32, %c0_i32_0 : i32, i32
  }
  func.func @transform_3(%arg0: i32) -> (i32, i32, i32) {
    %c0_i32 = arith.constant 0 : i32
    %c0_i32_0 = arith.constant 0 : i32
    %c0_i32_1 = arith.constant 0 : i32
    return %arg0, %c0_i32, %c0_i32_0 : i32, i32, i32
  }
}

</mosaic_0001>

<bundles_post_ra>
// kernel: tpu_custom_call.1
= control target key start
LH: loop header
LB: loop body
LE: loop exit
PB: predicated region body
PF: predicated region fallthrough
CT: control target
= control target key end

     0   :  { %8 = vsyncpa [#allocation3], 0  ;;  %s1068_s0 = inlined_call_operand.hbm [shape: bf16[16,256], index: 0, kind: input, shape index: {}]   ;;  %s1069_s1 = inlined_call_operand.hbm [shape: bf16[256,256], index: 1, kind: input, shape index: {}]   ;;  %s1070_s2 = inlined_call_operand.hbm [shape: bf16[256,256], index: 2, kind: input, shape index: {}]   ;;  %s1071_s3 = inlined_call_operand.hbm [shape: f32[1,1,256], index: 3, kind: output, shape index: {}]  }
   0x1   :  { %9 = vsyncpa [#allocation6], 0 }
   0x2   :  { %10 = vsyncpa [#allocation4], 0  ;;  %s941_s12 = smov [#allocation5]   ;;  %s942_s14 = smov [#allocation2]  }
   0x3   :  { %s28_s13 = sshll.u32 %s941_s12, 4  ;;  %s16_s15 = sshll.u32 %s942_s14, 4  ;;  %s29_s13 = int_to_ptr.vmem [resolvable:$true] %s28_s13  ;;  %s968_s15 = int_to_ptr.vmem [resolvable:$true] %s16_s15 }
   0x4   :  { %s847_s18 = scalar_lea.hbm %s1069_s1, 4096 }
   0x5   :  { %p848_p0 = scmp.ne.s32.totalorder %s1069_s1, %s847_s18  ;;  %p851_p1 = scmp.lt.u32.totalorder %s847_s18, %s1069_s1 }
   0x7   :  { %p853_p2 = pnand %p851_p1, %p848_p0 }
   0x9   :  { %856 = shalt.err (!%p853_p2)
}
   0xa   :  { %s857_s23 = scalar_lea.vmem %s29_s13, 4096  ;;  %p862_p4 = scmp.lt.s32.totalorder %s29_s13, %s29_s13 }
   0xb   :  { %p858_p3 = scmp.ne.s32.totalorder %s29_s13, %s857_s23  ;;  %p863_p5 = scmp.lt.s32.totalorder %s857_s23, %s857_s23 }
   0xd   :  { %p864_p6 = por %p863_p5, %p862_p4 }
   0xf   :  { %p865_p7 = pnand %p864_p6, %p858_p3 }
  0x11   :  { %868 = shalt.err (!%p865_p7)
}
  0x12   :  { %s943_s24 = smov 128   ;;  %s944_s25 = smov 8  }
  0x13   :  { %34 = dma.hbm_to_vmem [thread:$0]  %s1069_s1, 4096, %s29_s13, [#allocation6], %s943_s24, %s943_s24, %s944_s25  }
  0x14   :  { %s869_s30 = scalar_lea.hbm %s1068_s0, 256 }
  0x15   :  { %p870_p8 = scmp.ne.s32.totalorder %s1068_s0, %s869_s30  ;;  %p873_p9 = scmp.lt.u32.totalorder %s869_s30, %s1068_s0 }
  0x17   :  { %p875_p10 = pnand %p873_p9, %p870_p8 }
  0x19   :  { %878 = shalt.err (!%p875_p10)
}
  0x1a   :  { %s879_s8 = scalar_lea.vmem %s968_s15, 256  ;;  %p884_p12 = scmp.lt.s32.totalorder %s968_s15, %s968_s15 }
  0x1b   :  { %p880_p11 = scmp.ne.s32.totalorder %s968_s15, %s879_s8  ;;  %p885_p13 = scmp.lt.s32.totalorder %s879_s8, %s879_s8 }
  0x1d   :  { %p886_p0 = por %p885_p13, %p884_p12 }
  0x1f   :  { %p887_p1 = pnand %p886_p0, %p880_p11 }
  0x21   :  { %890 = shalt.err (!%p887_p1)
}
  0x22   :  { %22 = dma.hbm_to_vmem [thread:$0]  %s1068_s0, 256, %s968_s15, [#allocation3], %s943_s24, %s943_s24, %s944_s25  }
  0x23   :  { %s945_s10 = smov [#allocation7]   ;;  %s891_s14 = scalar_lea.hbm %s1070_s2, 4096 }
  0x24   :  { %s40_s11 = sshll.u32 %s945_s10, 4  ;;  %p892_p2 = scmp.ne.s32.totalorder %s1070_s2, %s891_s14  ;;  %s41_s11 = int_to_ptr.vmem [resolvable:$true] %s40_s11 }
  0x25   :  { %p895_p3 = scmp.lt.u32.totalorder %s891_s14, %s1070_s2 }
  0x27   :  { %p897_p4 = pnand %p895_p3, %p892_p2 }
  0x29   :  { %900 = shalt.err (!%p897_p4)
}
  0x2a   :  { %s901_s20 = scalar_lea.vmem %s41_s11, 4096  ;;  %p906_p6 = scmp.lt.s32.totalorder %s41_s11, %s41_s11 }
  0x2b   :  { %p902_p5 = scmp.ne.s32.totalorder %s41_s11, %s901_s20  ;;  %p907_p7 = scmp.lt.s32.totalorder %s901_s20, %s901_s20 }
  0x2d   :  { %p908_p8 = por %p907_p7, %p906_p6 }
  0x2f   :  { %p909_p9 = pnand %p908_p8, %p902_p5 }
  0x31   :  { %912 = shalt.err (!%p909_p9)
}
  0x32   :  { %46 = dma.hbm_to_vmem [thread:$0]  %s1070_s2, 4096, %s41_s11, [#allocation6], %s943_s24, %s943_s24, %s944_s25  }
  0x33   :  { %935 = dma.done.wait [#allocation3], 256  }
  0x34   :  { %936 = vsyncadd [#allocation3], 4294967040 }
  0x35   :  { %937 = dma.done.wait [#allocation6], 8192  }
  0x36   :  { %938 = vsyncadd [#allocation6], 4294959104  ;;  %v736_v0 = vld [vmem:[#allocation5 + $0x4] ss:$8 sps:$4 sm:$0xff]   ;;  %v740_v2 = vld [vmem:[#allocation5] ss:$8 sps:$4 sm:$0xff]  }
  0x37   :  { %v738_v1 = vld [vmem:[#allocation7 + $0x4] ss:$8 sps:$4 sm:$0xff]   ;;  %260 = vmatprep.subr.bf16.mxu0 %v736_v0  ;;  %v741_v3 = vld [vmem:[#allocation7] ss:$8 sps:$4 sm:$0xff]   ;;  %v742_v4 = vld [vmem:[#allocation5 + $0x14] ss:$8 sps:$4 sm:$0xff]  }
  0x38   :  { %495 = vmatprep.subr.bf16.mxu1 %v738_v1  ;;  %261 = vmatpush1.bf16.msra.mxu0 %v740_v2  ;;  %v744_v5 = vld [vmem:[#allocation7 + $0x14] ss:$8 sps:$4 sm:$0xff]   ;;  %v746_v6 = vld [vmem:[#allocation5 + $0x10] ss:$8 sps:$4 sm:$0xff]   ;;  %v748_v8 = vld [vmem:[#allocation5 + $0x24] ss:$8 sps:$4 sm:$0xff]  }
  0x39   :  { %496 = vmatpush1.bf16.msra.mxu1 %v741_v3  ;;  %262 = vmatprep.subr.bf16.mxu0 %v742_v4  ;;  %v747_v7 = vld [vmem:[#allocation7 + $0x10] ss:$8 sps:$4 sm:$0xff]   ;;  %v750_v9 = vld [vmem:[#allocation7 + $0x24] ss:$8 sps:$4 sm:$0xff]   ;;  %v752_v10 = vld [vmem:[#allocation5 + $0x20] ss:$8 sps:$4 sm:$0xff]  }
  0x3a   :  { %497 = vmatprep.subr.bf16.mxu1 %v744_v5  ;;  %v753_v11 = vld [vmem:[#allocation7 + $0x20] ss:$8 sps:$4 sm:$0xff]   ;;  %v754_v12 = vld [vmem:[#allocation5 + $0x34] ss:$8 sps:$4 sm:$0xff]   ;;  %v758_v14 = vld [vmem:[#allocation5 + $0x30] ss:$8 sps:$4 sm:$0xff]  }
  0x3b   :  { %v756_v13 = vld [vmem:[#allocation7 + $0x34] ss:$8 sps:$4 sm:$0xff]   ;;  %v759_v15 = vld [vmem:[#allocation7 + $0x30] ss:$8 sps:$4 sm:$0xff]   ;;  %v760_v16 = vld [vmem:[#allocation5 + $0x44] ss:$8 sps:$4 sm:$0xff]  }
  0x3c   :  { %263 = vmatpush1.bf16.msra.mxu0 %v746_v6  ;;  %v762_v17 = vld [vmem:[#allocation7 + $0x44] ss:$8 sps:$4 sm:$0xff]   ;;  %v764_v18 = vld [vmem:[#allocation5 + $0x40] ss:$8 sps:$4 sm:$0xff]   ;;  %v766_v20 = vld [vmem:[#allocation5 + $0x54] ss:$8 sps:$4 sm:$0xff]  }
  0x3d   :  { %498 = vmatpush1.bf16.msra.mxu1 %v747_v7  ;;  %264 = vmatprep.subr.bf16.mxu0 %v748_v8  ;;  %v765_v19 = vld [vmem:[#allocation7 + $0x40] ss:$8 sps:$4 sm:$0xff]   ;;  %v768_v21 = vld [vmem:[#allocation7 + $0x54] ss:$8 sps:$4 sm:$0xff]   ;;  %v770_v22 = vld [vmem:[#allocation5 + $0x50] ss:$8 sps:$4 sm:$0xff]  }
  0x3e   :  { %499 = vmatprep.subr.bf16.mxu1 %v750_v9  ;;  %v771_v23 = vld [vmem:[#allocation7 + $0x50] ss:$8 sps:$4 sm:$0xff]   ;;  %v772_v24 = vld [vmem:[#allocation5 + $0x64] ss:$8 sps:$4 sm:$0xff]   ;;  %v776_v26 = vld [vmem:[#allocation5 + $0x60] ss:$8 sps:$4 sm:$0xff]  }
  0x3f   :  { %v774_v25 = vld [vmem:[#allocation7 + $0x64] ss:$8 sps:$4 sm:$0xff]   ;;  %v777_v27 = vld [vmem:[#allocation7 + $0x60] ss:$8 sps:$4 sm:$0xff]   ;;  %v778_v28 = vld [vmem:[#allocation5 + $0x74] ss:$8 sps:$4 sm:$0xff]  }
  0x40   :  { %265 = vmatpush1.bf16.msra.mxu0 %v752_v10  ;;  %v780_v29 = vld [vmem:[#allocation7 + $0x74] ss:$8 sps:$4 sm:$0xff]   ;;  %v782_v30 = vld [vmem:[#allocation5 + $0x70] ss:$8 sps:$4 sm:$0xff]   ;;  %v784_v32 = vld [vmem:[#allocation5 + $0x84] ss:$8 sps:$4 sm:$0xff]  }
  0x41   :  { %500 = vmatpush1.bf16.msra.mxu1 %v753_v11  ;;  %266 = vmatprep.subr.bf16.mxu0 %v754_v12  ;;  %v783_v31 = vld [vmem:[#allocation7 + $0x70] ss:$8 sps:$4 sm:$0xff]   ;;  %v786_v33 = vld [vmem:[#allocation7 + $0x84] ss:$8 sps:$4 sm:$0xff]   ;;  %v788_v34 = vld [vmem:[#allocation5 + $0x80] ss:$8 sps:$4 sm:$0xff]  }
  0x42   :  { %501 = vmatprep.subr.bf16.mxu1 %v756_v13  ;;  %v789_v35 = vld [vmem:[#allocation7 + $0x80] ss:$8 sps:$4 sm:$0xff]   ;;  %v790_v36 = vld [vmem:[#allocation5 + $0x94] ss:$8 sps:$4 sm:$0xff]   ;;  %v794_v38 = vld [vmem:[#allocation5 + $0x90] ss:$8 sps:$4 sm:$0xff]  }
  0x43   :  { %v792_v37 = vld [vmem:[#allocation7 + $0x94] ss:$8 sps:$4 sm:$0xff]   ;;  %v795_v39 = vld [vmem:[#allocation7 + $0x90] ss:$8 sps:$4 sm:$0xff]   ;;  %v796_v40 = vld [vmem:[#allocation5 + $0xa4] ss:$8 sps:$4 sm:$0xff]  }
  0x44   :  { %267 = vmatpush1.bf16.msra.mxu0 %v758_v14  ;;  %v798_v41 = vld [vmem:[#allocation7 + $0xa4] ss:$8 sps:$4 sm:$0xff]   ;;  %v800_v42 = vld [vmem:[#allocation5 + $0xa0] ss:$8 sps:$4 sm:$0xff]   ;;  %v802_v44 = vld [vmem:[#allocation5 + $0xb4] ss:$8 sps:$4 sm:$0xff]  }
  0x45   :  { %502 = vmatpush1.bf16.msra.mxu1 %v759_v15  ;;  %268 = vmatprep.subr.bf16.mxu0 %v760_v16  ;;  %v801_v43 = vld [vmem:[#allocation7 + $0xa0] ss:$8 sps:$4 sm:$0xff]   ;;  %v804_v45 = vld [vmem:[#allocation7 + $0xb4] ss:$8 sps:$4 sm:$0xff]   ;;  %v806_v47 = vld [vmem:[#allocation5 + $0xb0] ss:$8 sps:$4 sm:$0xff]  }
  0x46   :  { %503 = vmatprep.subr.bf16.mxu1 %v762_v17  ;;  %v834_v46 = vld [vmem:[#allocation2 + $0x4] ss:$8 sps:$4 sm:$0xff]   ;;  %v807_v48 = vld [vmem:[#allocation7 + $0xb0] ss:$8 sps:$4 sm:$0xff]   ;;  %v808_v49 = vld [vmem:[#allocation5 + $0xc4] ss:$8 sps:$4 sm:$0xff]  }
  0x47   :  { %v810_v50 = vld [vmem:[#allocation7 + $0xc4] ss:$8 sps:$4 sm:$0xff]   ;;  %292 = vmatprep.mubr.bf16.mxu0 %v834_v46  ;;  %527 = vmatprep.mubr.bf16.mxu1 %v834_v46  ;;  %v812_v51 = vld [vmem:[#allocation5 + $0xc0] ss:$8 sps:$4 sm:$0xff]   ;;  %v814_v53 = vld [vmem:[#allocation5 + $0xd4] ss:$8 sps:$4 sm:$0xff]  }
  0x48   :  { %269 = vmatpush1.bf16.msra.mxu0 %v764_v18  ;;  %v813_v52 = vld [vmem:[#allocation7 + $0xc0] ss:$8 sps:$4 sm:$0xff]   ;;  %v816_v54 = vld [vmem:[#allocation7 + $0xd4] ss:$8 sps:$4 sm:$0xff]   ;;  %v818_v55 = vld [vmem:[#allocation5 + $0xd0] ss:$8 sps:$4 sm:$0xff]  }
  0x49   :  { %504 = vmatpush1.bf16.msra.mxu1 %v765_v19  ;;  %270 = vmatprep.subr.bf16.mxu0 %v766_v20  ;;  %v819_v56 = vld [vmem:[#allocation7 + $0xd0] ss:$8 sps:$4 sm:$0xff]   ;;  %v820_v57 = vld [vmem:[#allocation5 + $0xe4] ss:$8 sps:$4 sm:$0xff]   ;;  %v824_v59 = vld [vmem:[#allocation5 + $0xe0] ss:$8 sps:$4 sm:$0xff]  }
  0x4a   :  { %505 = vmatprep.subr.bf16.mxu1 %v768_v21  ;;  %v822_v58 = vld [vmem:[#allocation7 + $0xe4] ss:$8 sps:$4 sm:$0xff]   ;;  %v825_v60 = vld [vmem:[#allocation7 + $0xe0] ss:$8 sps:$4 sm:$0xff]   ;;  %v826_v61 = vld [vmem:[#allocation5 + $0xf4] ss:$8 sps:$4 sm:$0xff]  }
  0x4b   :  { %v828_v62 = vld [vmem:[#allocation7 + $0xf4] ss:$8 sps:$4 sm:$0xff]   ;;  %v830_v63 = vld [vmem:[#allocation5 + $0xf0] ss:$8 sps:$4 sm:$0xff]   ;;  %s947_s2 = smov [#allocation8]  }
  0x4c   :  { %271 = vmatpush1.bf16.msra.mxu0 %v770_v22  ;;  %v831_v0 = vld [vmem:[#allocation7 + $0xf0] ss:$8 sps:$4 sm:$0xff]   ;;  %s653_s21 = sshll.u32 %s947_s2, 4  ;;  %s654_s21 = int_to_ptr.vmem [resolvable:$true] %s653_s21 }
  0x4d   :  { %506 = vmatpush1.bf16.msra.mxu1 %v771_v23  ;;  %272 = vmatprep.subr.bf16.mxu0 %v772_v24  ;;  %v832_v1 = vld [vmem:[#allocation2] ss:$8 sps:$4 sm:$0xff]   ;;  %s913_s22 = scalar_lea.vmem %s654_s21, 32  ;;  %p918_p11 = scmp.lt.s32.totalorder %s654_s21, %s654_s21 }
  0x4e   :  { %507 = vmatprep.subr.bf16.mxu1 %v774_v25  ;;  %p914_p10 = scmp.ne.s32.totalorder %s654_s21, %s913_s22  ;;  %p919_p12 = scmp.lt.s32.totalorder %s913_s22, %s913_s22 }
  0x50   :  { %273 = vmatpush1.bf16.msra.mxu0 %v776_v26  ;;  %p920_p13 = por %p919_p12, %p918_p11 }
  0x51   :  { %508 = vmatpush1.bf16.msra.mxu1 %v777_v27  ;;  %274 = vmatprep.subr.bf16.mxu0 %v778_v28 }
  0x52   :  { %509 = vmatprep.subr.bf16.mxu1 %v780_v29  ;;  %p921_p0 = pnand %p920_p13, %p914_p10 }
  0x54   :  { %275 = vmatpush1.bf16.msra.mxu0 %v782_v30 }
  0x55   :  { %510 = vmatpush1.bf16.msra.mxu1 %v783_v31  ;;  %276 = vmatprep.subr.bf16.mxu0 %v784_v32 }
  0x56   :  { %511 = vmatprep.subr.bf16.mxu1 %v786_v33 }
  0x58   :  { %277 = vmatpush1.bf16.msra.mxu0 %v788_v34 }
  0x59   :  { %512 = vmatpush1.bf16.msra.mxu1 %v789_v35  ;;  %278 = vmatprep.subr.bf16.mxu0 %v790_v36 }
  0x5a   :  { %513 = vmatprep.subr.bf16.mxu1 %v792_v37 }
  0x5c   :  { %279 = vmatpush1.bf16.msra.mxu0 %v794_v38 }
  0x5d   :  { %514 = vmatpush1.bf16.msra.mxu1 %v795_v39  ;;  %280 = vmatprep.subr.bf16.mxu0 %v796_v40 }
  0x5e   :  { %515 = vmatprep.subr.bf16.mxu1 %v798_v41 }
  0x60   :  { %281 = vmatpush1.bf16.msra.mxu0 %v800_v42 }
  0x61   :  { %516 = vmatpush1.bf16.msra.mxu1 %v801_v43  ;;  %282 = vmatprep.subr.bf16.mxu0 %v802_v44 }
  0x62   :  { %517 = vmatprep.subr.bf16.mxu1 %v804_v45 }
  0x64   :  { %283 = vmatpush1.bf16.msra.mxu0 %v806_v47 }
  0x65   :  { %518 = vmatpush1.bf16.msra.mxu1 %v807_v48  ;;  %284 = vmatprep.subr.bf16.mxu0 %v808_v49 }
  0x66   :  { %519 = vmatprep.subr.bf16.mxu1 %v810_v50 }
  0x68   :  { %285 = vmatpush1.bf16.msra.mxu0 %v812_v51 }
  0x69   :  { %520 = vmatpush1.bf16.msra.mxu1 %v813_v52  ;;  %286 = vmatprep.subr.bf16.mxu0 %v814_v53 }
  0x6a   :  { %521 = vmatprep.subr.bf16.mxu1 %v816_v54 }
  0x6c   :  { %287 = vmatpush1.bf16.msra.mxu0 %v818_v55 }
  0x6d   :  { %522 = vmatpush1.bf16.msra.mxu1 %v819_v56  ;;  %288 = vmatprep.subr.bf16.mxu0 %v820_v57 }
  0x6e   :  { %523 = vmatprep.subr.bf16.mxu1 %v822_v58 }
  0x70   :  { %289 = vmatpush1.bf16.msra.mxu0 %v824_v59 }
  0x71   :  { %524 = vmatpush1.bf16.msra.mxu1 %v825_v60  ;;  %290 = vmatprep.subr.bf16.mxu0 %v826_v61 }
  0x72   :  { %525 = vmatprep.subr.bf16.mxu1 %v828_v62 }
  0x74   :  { %291 = vmatpush1.bf16.msra.mxu0 %v830_v63 }
  0x75   :  { %526 = vmatpush1.bf16.msra.mxu1 %v831_v0 }
  0x77   :  { %293 = vmatmul.mubr.bf16.vlgmr.msra.gmra.mrb[0].mxu0 %v832_v1 }
  0x78   :  { %528 = vmatmul.mubr.bf16.vlgmr.msra.gmra.mrb[0].mxu1 %v832_v1 }
 0x14a   :  { %v294_v2 = vpop.f32.mrb[0].mxu0 }
 0x14b   :  { %v529_v3 = vpop.f32.mrb[0].mxu1  ;;  %v538_v4 = vmul.f32 %v294_v2, %v294_v2  ;;  %v296_v6 = vpop.f32.mrb[1].mxu0 }
 0x14c   :  { %v542_v5 = vmul.f32 %v529_v3, %v529_v3  ;;  %v531_v7 = vpop.f32.mrb[1].mxu1  ;;  %v539_v8 = vmul.f32 %v296_v6, %v296_v6  ;;  %v298_v10 = vpop.f32.mrb[2].mxu0 }
 0x14d   :  { %v543_v9 = vmul.f32 %v531_v7, %v531_v7  ;;  %v533_v11 = vpop.f32.mrb[2].mxu1  ;;  %v540_v13 = vmul.f32 %v298_v10, %v298_v10  ;;  %v300_v15 = vpop.f32.mrb[3].mxu0  ;;  %v946_v10 = vmov 1966171168  }
 0x14e   :  { %v1020_v12 = vadd.f32 %v542_v5, %v538_v4  ;;  %v544_v14 = vmul.f32 %v533_v11, %v533_v11  ;;  %v535_v16 = vpop.f32.mrb[3].mxu1  ;;  %v541_v18 = vmul.f32 %v300_v15, %v300_v15  ;;  %v628_v11 = vunpack.c.l.s4 %v946_v10 }
 0x14f   :  { %v1022_v17 = vadd.f32 %v543_v9, %v539_v8  ;;  %v545_v19 = vmul.f32 %v535_v16, %v535_v16 }
 0x150   :  { %v1024_v20 = vadd.f32 %v544_v14, %v540_v13  ;;  %835 = vrsqrt.f32 %v1020_v12  ;;  %vm552_vm0 = vcmp.eq.f32.partialorder %v1020_v12, inf  ;;  %vm554_vm1 = vcmp.eq.f32.partialorder %v1020_v12, 0.0 }
 0x151   :  { %v1027_v21 = vadd.f32 %v545_v19, %v541_v18  ;;  %837 = vrsqrt.f32 %v1022_v17  ;;  %v555_v26 = vand.u32 2147483648, %v1020_v12  ;;  %vm559_vm2 = vcmp.eq.f32.partialorder %v1022_v17, inf }
 0x152   :  { %839 = vrsqrt.f32 %v1024_v20  ;;  %vm561_vm3 = vcmp.eq.f32.partialorder %v1022_v17, 0.0  ;;  %v562_v30 = vand.u32 2147483648, %v1022_v17  ;;  %vm566_vm4 = vcmp.eq.f32.partialorder %v1024_v20, inf }
 0x153   :  { %841 = vrsqrt.f32 %v1027_v21  ;;  %v569_v34 = vand.u32 2147483648, %v1024_v20  ;;  %vm573_vm5 = vcmp.eq.f32.partialorder %v1027_v21, inf  ;;  %v576_v38 = vand.u32 2147483648, %v1027_v21 }
 0x154   :  { %vm568_vm6 = vcmp.eq.f32.partialorder %v1024_v20, 0.0  ;;  %vm575_vm7 = vcmp.eq.f32.partialorder %v1027_v21, 0.0  ;;  %v630_v13 = vlaneseq }
 0x156   :  { %v631_v19 = vshrl.u32 %v630_v13, 7  ;;  %vm644_vm12 = vcmp.lt.s32.totalorder %v630_v13, 256 }
 0x15a   :  { %v836_v22 = vpop.eup %835 }
 0x15b   :  { %v838_v23 = vpop.eup %837  ;;  %v551_v24 = vmul.f32 %v836_v22, %v1020_v12 }
 0x15c   :  { %v840_v25 = vpop.eup %839  ;;  %v558_v27 = vmul.f32 %v838_v23, %v1022_v17 }
 0x15d   :  { %v842_v28 = vpop.eup %841  ;;  %v553_v29 = vsel %vm552_vm0, %v1020_v12, %v551_v24  ;;  %v565_v31 = vmul.f32 %v840_v25, %v1024_v20 }
 0x15e   :  { %v556_v32 = vsel %vm554_vm1, %v555_v26, %v553_v29  ;;  %v560_v33 = vsel %vm559_vm2, %v1022_v17, %v558_v27  ;;  %v572_v35 = vmul.f32 %v842_v28, %v1027_v21 }
 0x15f   :  { %v563_v36 = vsel %vm561_vm3, %v562_v30, %v560_v33  ;;  %v567_v37 = vsel %vm566_vm4, %v1024_v20, %v565_v31 }
 0x160   :  { %v578_v39 = vmax.f32 %v556_v32, %v563_v36  ;;  %v574_v40 = vsel %vm573_vm5, %v1027_v21, %v572_v35  ;;  %v570_v41 = vsel %vm568_vm6, %v569_v34, %v567_v37 }
 0x161   :  { %v577_v42 = vsel %vm575_vm7, %v576_v38, %v574_v40 }
 0x162   :  { %579 = vmax.xlane.f32.xlu0 %v578_v39  ;;  %v581_v43 = vmax.f32 %v570_v41, %v577_v42 }
 0x166   :  { %582 = vmax.xlane.f32.xlu0 %v581_v43 }
 0x1ef   :  { %v580_v44 = vpop.xlane.xlu0 %579 }
 0x1f0   :  { %843 = vrcp.f32 %v580_v44 }
 0x1f3   :  { %v583_v45 = vpop.xlane.xlu0 %582 }
 0x1f4   :  { %845 = vrcp.f32 %v583_v45 }
 0x1fa   :  { %v844_v46 = vpop.eup %843 }
 0x1fb   :  { %v586_v47 = vmul.f32 %v844_v46, %v556_v32  ;;  %v587_v48 = vmul.f32 %v844_v46, %v563_v36 }
 0x1fd   :  { %vm590_vm8 = vcmp.ne.f32.partialorder %v586_v47, %v586_v47  ;;  %vm591_vm9 = vcmp.ne.f32.partialorder %v587_v48, %v587_v48 }
 0x1fe   :  { %v846_v49 = vpop.eup %845  ;;  %v594_v50 = vsel %vm590_vm8, 0.0, %v586_v47  ;;  %v595_v51 = vsel %vm591_vm9, 0.0, %v587_v48 }
 0x1ff   :  { %v598_v52 = vmax.f32 %v594_v50, 0.0  ;;  %v599_v53 = vmax.f32 %v595_v51, 0.0  ;;  %v588_v54 = vmul.f32 %v846_v49, %v570_v41  ;;  %v589_v55 = vmul.f32 %v846_v49, %v577_v42 }
 0x201   :  { %vm592_vm10 = vcmp.ne.f32.partialorder %v588_v54, %v588_v54  ;;  %vm593_vm11 = vcmp.ne.f32.partialorder %v589_v55, %v589_v55  ;;  %v602_v58 = vmin.f32 %v598_v52, 1.0  ;;  %v603_v59 = vmin.f32 %v599_v53, 1.0 }
 0x202   :  { %v596_v56 = vsel %vm592_vm10, 0.0, %v588_v54  ;;  %v597_v57 = vsel %vm593_vm11, 0.0, %v589_v55 }
 0x203   :  { %v600_v60 = vmax.f32 %v596_v56, 0.0  ;;  %v601_v61 = vmax.f32 %v597_v57, 0.0  ;;  %v606_v0 = vmul.f32 %v602_v58, %v1020_v12  ;;  %v607_v1 = vmul.f32 %v603_v59, %v1022_v17 }
 0x204   :  { %v629_v12 = vunpack.c.0.s8 %v628_v11 }
 0x205   :  { %v604_v62 = vmin.f32 %v600_v60, 1.0  ;;  %v605_v63 = vmin.f32 %v601_v61, 1.0 }
 0x207   :  { %v608_v2 = vmul.f32 %v604_v62, %v1024_v20  ;;  %v609_v3 = vmul.f32 %v605_v63, %v1027_v21  ;;  %v632_v21 = vsub.s32 %v629_v12, %v631_v19 }
 0x209   :  { %v610_v4 = vadd.f32 %v608_v2, %v606_v0  ;;  %v617_v5 = vadd.f32 %v609_v3, %v607_v1 }
 0x20b   :  { %v611_v6 = vrot.slane %v610_v4, 4  ;;  %v618_v7 = vrot.slane %v617_v5, 4 }
 0x20d   :  { %v612_v8 = vadd.f32 %v611_v6, %v610_v4  ;;  %v619_v9 = vadd.f32 %v618_v7, %v617_v5 }
 0x20f   :  { %v613_v14 = vrot.slane %v612_v8, 2  ;;  %v620_v15 = vrot.slane %v619_v9, 2 }
 0x211   :  { %v614_v16 = vadd.f32 %v613_v14, %v612_v8  ;;  %v621_v18 = vadd.f32 %v620_v15, %v619_v9 }
 0x213   :  { %v615_v17 = vrot.slane %v614_v16, 1  ;;  %v622_v22 = vrot.slane %v621_v18, 1 }
 0x215   :  { %v616_v20 = vadd.f32 %v615_v17, %v614_v16  ;;  %v623_v23 = vadd.f32 %v622_v22, %v621_v18 }
 0x217   :  { %v626_v24 = vcombine.low %v616_v20, %v623_v23 }
 0x219   :  { %v633_v25 = vrot.slane %v626_v24, %v632_v21 }
 0x21b   :  { %v640_v26 = vrot.slane %v633_v25, %v632_v21 }
 0x21d   :  { %646 = vst.msk [vmem:[#allocation8] sm:$0x3] %vm644_vm12, %v640_v26 }
 0x21e   :  { %924 = shalt.err (!%p921_p0)
}
 0x21f   :  { %s925_s25 = scalar_lea.hbm %s1071_s3, 32 }
 0x220   :  { %p926_p1 = scmp.ne.s32.totalorder %s1071_s3, %s925_s25  ;;  %p929_p2 = scmp.lt.u32.totalorder %s925_s25, %s1071_s3 }
 0x222   :  { %p931_p3 = pnand %p929_p2, %p926_p1 }
 0x224   :  { %934 = shalt.err (!%p931_p3)
}
 0x225   :  { %656 = dma.vmem_to_hbm [thread:$0]  %s654_s21, 32, %s1071_s3, [#allocation4]  }
 0x226   :  { %939 = dma.done.wait [#allocation4], 32  }
 0x227   :  { %940 = vsyncadd [#allocation4], 4294967264 }
 0x228   :  { %660 = vsyncpa [#allocation3], 1 }
 0x229   :  { %661 = vsyncpa [#allocation6], 1 }
 0x22a   :  { %662 = vsyncpa [#allocation4], 1 }

</bundles_post_ra>
